<compile_context>
chip_gen: v6e
topology: v6e:2x2x1
jax: 0.10.0
libtpu: 0.0.40
codegen_flags: <defaults>
</compile_context>

<pallas_src>
import jax
import jax.numpy as jnp
from jax.experimental import pallas as pl
from jax.experimental.pallas import tpu as pltpu


def _round_up(x, m):
    return ((x + m - 1) // m) * m


def _balanced_tile(n, max_tile, align):
    """Tile size (multiple of `align`) covering n in ceil(n/max_tile) blocks.

    Returns (tile, padded_total) with padded_total = tile * num_blocks >= n.
    Keeps padding waste small vs. always padding to max_tile.
    """
    n = max(n, 1)
    nblk = -(-n // max_tile)
    tile = _round_up(-(-n // nblk), align)
    return tile, tile * nblk


# ----------------------------- Pallas kernels --------------------------------
def _linear_kernel(x_ref, w_ref, o_ref):
    # XW = X @ W^T  (bf16 operands, f32 MXU accumulation, bf16 result)
    o_ref[...] = jnp.dot(
        x_ref[...], w_ref[...], preferred_element_type=jnp.float32
    ).astype(o_ref.dtype)


def _hetero_agg_kernel(a_ref, xw_ref, xd_ref, wr_ref, b_ref, o_ref, acc_ref):
    # Fused HeteroConv layer for one destination node type:
    #   out = A_cat @ XW_cat  +  X_dst @ W_r_sum^T  +  b_sum
    # Grid: (i = N_dst row tiles [parallel], k = N_src_cat blocks [arbitrary]).
    k = pl.program_id(1)

    @pl.when(k == 0)
    def _():
        acc_ref[...] = jnp.zeros_like(acc_ref)

    acc_ref[...] += jnp.dot(
        a_ref[...], xw_ref[...], preferred_element_type=jnp.float32
    )

    @pl.when(k == pl.num_programs(1) - 1)
    def _():
        root = jnp.dot(
            xd_ref[...], wr_ref[...], preferred_element_type=jnp.float32
        )
        o_ref[...] = (acc_ref[...] + root + b_ref[...]).astype(o_ref.dtype)


# ----------------------------- Pallas wrappers --------------------------------
def linear_xwT_pallas(x, w):
    """bf16 [N, C] @ [C, H] (w given as [H, C], torch Linear convention) -> bf16 [N, H]."""
    N, C = x.shape
    H = w.shape[0]
    tm, Np = _balanced_tile(N, 128, 8)
    Cp = _round_up(C, 128)
    Hp = _round_up(H, 128)

    xp = jnp.pad(x.astype(jnp.bfloat16), ((0, Np - N), (0, Cp - C)))
    wp = jnp.pad(w.T.astype(jnp.bfloat16), ((0, Cp - C), (0, Hp - H)))

    out = pl.pallas_call(
        _linear_kernel,
        out_shape=jax.ShapeDtypeStruct((Np, Hp), jnp.bfloat16),
        grid_spec=pltpu.PrefetchScalarGridSpec(
            num_scalar_prefetch=0,
            grid=(Np // tm,),
            in_specs=[
                pl.BlockSpec((tm, Cp), lambda i: (i, 0)),
                pl.BlockSpec((Cp, Hp), lambda i: (0, 0)),
            ],
            out_specs=pl.BlockSpec((tm, Hp), lambda i: (i, 0)),
        ),
        compiler_params=pltpu.CompilerParams(dimension_semantics=("parallel",)),
    )(xp, wp)
    return out[:N, :H]


def hetero_agg_pallas(A_cat, xw_cat, x_dst, wr_sum, b_sum, *, tile_m=128, tile_k=512):
    """Fused HeteroConv layer for one destination node type.

    A_cat:  [N_dst, N_src_cat]  concatenated row-normalized adjacencies
    xw_cat: [N_src_cat, H]      concatenated (x_src @ W_l^T) per edge type (bf16)
    x_dst:  [N_dst, C_dst]
    wr_sum: [H, C_dst]          sum over edge types of W_r
    b_sum:  [H]                 sum over edge types of b_l
    returns f32 [N_dst, H]
    """
    Nd, Ns = A_cat.shape
    H = xw_cat.shape[1]
    Cd = x_dst.shape[1]

    tm, Ndp = _balanced_tile(Nd, tile_m, 8)      # sublane-dense output row tiles
    tk, Nsp = _balanced_tile(Ns, tile_k, 128)    # lane-dense K-reduction blocks
    Hp = _round_up(H, 128)
    Cdp = _round_up(Cd, 128)

    Ap = jnp.pad(A_cat.astype(jnp.bfloat16), ((0, Ndp - Nd), (0, Nsp - Ns)))
    xwp = jnp.pad(xw_cat.astype(jnp.bfloat16), ((0, Nsp - Ns), (0, Hp - H)))
    xdp = jnp.pad(x_dst.astype(jnp.bfloat16), ((0, Ndp - Nd), (0, Cdp - Cd)))
    wrp = jnp.pad(wr_sum.T.astype(jnp.bfloat16), ((0, Cdp - Cd), (0, Hp - H)))
    bp = jnp.pad(b_sum.reshape(1, H).astype(jnp.float32), ((0, 0), (0, Hp - H)))

    out = pl.pallas_call(
        _hetero_agg_kernel,
        out_shape=jax.ShapeDtypeStruct((Ndp, Hp), jnp.float32),
        grid_spec=pltpu.PrefetchScalarGridSpec(
            num_scalar_prefetch=0,
            grid=(Ndp // tm, Nsp // tk),
            in_specs=[
                pl.BlockSpec((tm, tk), lambda i, k: (i, k)),    # A_cat tile
                pl.BlockSpec((tk, Hp), lambda i, k: (k, 0)),    # XW_cat K-strip
                pl.BlockSpec((tm, Cdp), lambda i, k: (i, 0)),   # X_dst row tile (constant over k)
                pl.BlockSpec((Cdp, Hp), lambda i, k: (0, 0)),   # W_r_sum^T (resident)
                pl.BlockSpec((1, Hp), lambda i, k: (0, 0)),     # bias sum (resident)
            ],
            out_specs=pl.BlockSpec((tm, Hp), lambda i, k: (i, 0)),
            scratch_shapes=[pltpu.VMEM((tm, Hp), jnp.float32)],
        ),
        compiler_params=pltpu.CompilerParams(
            dimension_semantics=("parallel", "arbitrary")
        ),
    )(Ap, xwp, xdp, wrp, bp)
    return out[:Nd, :H]


# -------------------------- plain-JAX equivalents -----------------------------
def linear_xwT_jnp(x, w):
    return jnp.dot(
        x.astype(jnp.bfloat16), w.T.astype(jnp.bfloat16),
        preferred_element_type=jnp.float32,
    ).astype(jnp.bfloat16)


def hetero_agg_jnp(A_cat, xw_cat, x_dst, wr_sum, b_sum):
    agg = jnp.dot(A_cat.astype(jnp.bfloat16), xw_cat.astype(jnp.bfloat16),
                  preferred_element_type=jnp.float32)
    root = jnp.dot(x_dst.astype(jnp.bfloat16), wr_sum.T.astype(jnp.bfloat16),
                   preferred_element_type=jnp.float32)
    return agg + root + b_sum.astype(jnp.float32)[None, :]


def mean_adj(edge_index, n_src, n_dst):
    """Dense row-normalized adjacency realizing PyG 'mean' aggregation."""
    src = edge_index[0]
    dst = edge_index[1]
    counts = jnp.zeros((n_dst, n_src), jnp.float32).at[dst, src].add(1.0)
    deg = counts.sum(axis=1, keepdims=True)
    return jnp.where(deg > 0, counts / jnp.maximum(deg, 1.0), 0.0)


# ------------------------------ model glue ------------------------------------
def init_params(key, metadata, in_channels, hidden_channels, num_layers):
    _, edge_types = metadata
    params = []
    for layer in range(num_layers):
        layer_params = {}
        for et in edge_types:
            src, _, dst = et
            c_src = in_channels[src] if layer == 0 else hidden_channels
            c_dst = in_channels[dst] if layer == 0 else hidden_channels
            key, k1, k2, k3 = jax.random.split(key, 4)
            layer_params[et] = {
                "w_l": 0.1 * jax.random.normal(k1, (hidden_channels, c_src), jnp.float32),
                "b_l": 0.1 * jax.random.normal(k2, (hidden_channels,), jnp.float32),
                "w_r": 0.1 * jax.random.normal(k3, (hidden_channels, c_dst), jnp.float32),
            }
        params.append(layer_params)
    return params


def hetero_gnn_forward(params, x_dict, edge_index_dict, num_nodes, use_pallas=True):
    """Forward pass of the HeteroGNN (bf16 matmuls, f32 accumulation)."""
    lin = linear_xwT_pallas if use_pallas else linear_xwT_jnp
    agg = hetero_agg_pallas if use_pallas else hetero_agg_jnp

    # Mean-aggregation operators depend only on edge_index -> build ONCE.
    A_by_et = {
        et: mean_adj(ei, num_nodes[et[0]], num_nodes[et[2]])
        for et, ei in edge_index_dict.items()
    }
    # Group edge types by destination node type (HeteroConv default aggr='sum').
    dst_groups = {}
    for et in edge_index_dict:
        dst_groups.setdefault(et[2], []).append(et)

    for layer_params in params:
        # 1) Neighbor path XW = X_src @ W_l^T for every active edge type,
        #    one linear kernel launch per SOURCE node type (weights concatenated).
        src_groups = {}
        for et in edge_index_dict:
            if et[0] in x_dict and et[2] in x_dict:
                src_groups.setdefault(et[0], []).append(et)
        xw_by_et = {}
        for src, ets in src_groups.items():
            w_cat = jnp.concatenate([layer_params[et]["w_l"] for et in ets], axis=0)
            xw_all = lin(x_dict[src], w_cat)          # [N_src, len(ets)*H]
            H = layer_params[ets[0]]["w_l"].shape[0]
            for idx, et in enumerate(ets):
                xw_by_et[et] = xw_all[:, idx * H:(idx + 1) * H]

        # 2) Per destination type: fused A_cat @ XW_cat + root + bias (+ hetero 'sum').
        out_dict = {}
        for dst, ets in dst_groups.items():
            if dst not in x_dict:
                continue
            avail = [et for et in ets if et in xw_by_et]
            if not avail:
                continue
            xw_cat = jnp.concatenate([xw_by_et[et] for et in avail], axis=0)
            A_cat = jnp.concatenate([A_by_et[et] for et in avail], axis=1)
            wr_sum = sum(layer_params[et]["w_r"] for et in avail)
            b_sum = sum(layer_params[et]["b_l"] for et in avail)
            out_dict[dst] = agg(A_cat, xw_cat, x_dict[dst], wr_sum, b_sum)
        x_dict = out_dict
    return x_dict


def hetero_gnn_forward_f32(params, x_dict, edge_index_dict, num_nodes):
    """Full-f32, original-association PyG-semantics reference."""
    A_by_et = {
        et: mean_adj(ei, num_nodes[et[0]], num_nodes[et[2]])
        for et, ei in edge_index_dict.items()
    }
    for layer_params in params:
        out_dict = {}
        for et, p in layer_params.items():
            src, _, dst = et
            if src not in x_dict or dst not in x_dict or et not in A_by_et:
                continue
            A = A_by_et[et]
            out = (A @ x_dict[src]) @ p["w_l"].T + p["b_l"] + x_dict[dst] @ p["w_r"].T
            out_dict[dst] = out_dict[dst] + out if dst in out_dict else out
        x_dict = out_dict
    return x_dict


# ---------------------------------- main ---------------------------------------
if __name__ == "__main__":
    key = jax.random.PRNGKey(0)

    node_types = ["author", "paper"]
    edge_types = [
        ("author", "writes", "paper"),
        ("paper", "written_by", "author"),
        ("paper", "cites", "paper"),
    ]
    metadata = (node_types, edge_types)
    in_channels = {"author": 32, "paper": 48}
    hidden_channels = 32
    num_layers = 3
    num_nodes = {"author": 10, "paper": 14}
    num_edges = 20

    # node features
    key, ka, kp = jax.random.split(key, 3)
    x_dict = {
        "author": jax.random.normal(ka, (num_nodes["author"], in_channels["author"]), jnp.float32),
        "paper": jax.random.normal(kp, (num_nodes["paper"], in_channels["paper"]), jnp.float32),
    }

    # random edges per edge type
    edge_index_dict = {}
    for et in edge_types:
        src, _, dst = et
        key, k1, k2 = jax.random.split(key, 3)
        s = jax.random.randint(k1, (num_edges,), 0, num_nodes[src], jnp.int32)
        d = jax.random.randint(k2, (num_edges,), 0, num_nodes[dst], jnp.int32)
        edge_index_dict[et] = jnp.stack([s, d], axis=0)

    key, kparam = jax.random.split(key)
    params = init_params(kparam, metadata, in_channels, hidden_channels, num_layers)

    # Pallas-kernel forward
    out_pallas = hetero_gnn_forward(params, x_dict, edge_index_dict, num_nodes, use_pallas=True)
    out_pallas = jax.tree_util.tree_map(jax.block_until_ready, out_pallas)

    # 1) identical-math plain-JAX path (bf16 operands, f32 accumulate) -> tight check
    out_jnp = hetero_gnn_forward(params, x_dict, edge_index_dict, num_nodes, use_pallas=False)
    # 2) full-f32 PyG-semantics reference -> loose check (bf16 quantization drift)
    out_f32 = hetero_gnn_forward_f32(params, x_dict, edge_index_dict, num_nodes)

    for nt in out_pallas:
        assert out_pallas[nt].shape == (num_nodes[nt], hidden_channels)
        if not jnp.allclose(out_pallas[nt], out_jnp[nt], atol=2e-2, rtol=2e-2):
            raise AssertionError(f"kernel vs same-math JAX mismatch for node type {nt}")
        rel = jnp.linalg.norm(out_pallas[nt] - out_f32[nt]) / (
            jnp.linalg.norm(out_f32[nt]) + 1e-6
        )
        if rel > 0.06:
            raise AssertionError(f"kernel vs f32 reference rel-err {rel:.4f} for node type {nt}")

    print("KERNEL_OK")
</pallas_src>

<mosaic_0001>
module attributes {stable_mosaic.version = 11 : i64} {
  func.func @_linear_kernel(%arg0: i32, %arg1: memref<16x128xbf16, #tpu.memory_space<vmem>>, %arg2: memref<128x128xbf16, #tpu.memory_space<vmem>>, %arg3: memref<16x128xbf16, #tpu.memory_space<vmem>>) attributes {dimension_semantics = [#tpu.dimension_semantics<parallel>], iteration_bounds = array<i64: 1>, scalar_prefetch = 0 : i64, scratch_operands = 0 : i64, tpu.core_type = #tpu.core_type<tc>, window_params = [{transform_indices = @transform_0, window_bounds = array<i64: 16, 128>}, {pipeline_mode = #tpu.pipeline_mode<synchronous>, transform_indices = @transform_1, window_bounds = array<i64: 128, 128>}, {transform_indices = @transform_2, window_bounds = array<i64: 16, 128>}]} {
    %c0 = arith.constant 0 : index
    %c0_0 = arith.constant 0 : index
    %0 = vector.load %arg1[%c0, %c0_0] : memref<16x128xbf16, #tpu.memory_space<vmem>>, vector<16x128xbf16>
    %c0_1 = arith.constant 0 : index
    %c0_2 = arith.constant 0 : index
    %1 = vector.load %arg2[%c0_1, %c0_2] : memref<128x128xbf16, #tpu.memory_space<vmem>>, vector<128x128xbf16>
    %cst = arith.constant dense<0.000000e+00> : vector<16x128xf32>
    %2 = tpu.matmul %0, %1, %cst {dimension_numbers = #tpu.dot_dimension_numbers<[1], [0], [0], [1], [0, 0, 1, 1], [], []>} : vector<16x128xbf16>, vector<128x128xbf16>, vector<16x128xf32> -> vector<16x128xf32>
    %3 = arith.truncf %2 : vector<16x128xf32> to vector<16x128xbf16>
    %c0_3 = arith.constant 0 : index
    %c0_4 = arith.constant 0 : index
    %4 = vector.load %arg3[%c0_3, %c0_4] : memref<16x128xbf16, #tpu.memory_space<vmem>>, vector<16x128xbf16>
    tpu.vector_store %arg3[%c0_3, %c0_4], %3 {strides = array<i32>} : memref<16x128xbf16, #tpu.memory_space<vmem>>, vector<16x128xbf16>,
    return
  }
  func.func @transform_0(%arg0: i32) -> (i32, i32) {
    %c0_i32 = arith.constant 0 : i32
    %c0_i32_0 = arith.constant 0 : i32
    return %arg0, %c0_i32 : i32, i32
  }
  func.func @transform_1(%arg0: i32) -> (i32, i32) {
    %c0_i32 = arith.constant 0 : i32
    %c0_i32_0 = arith.constant 0 : i32
    %c0_i32_1 = arith.constant 0 : i32
    return %c0_i32, %c0_i32_0 : i32, i32
  }
  func.func @transform_2(%arg0: i32) -> (i32, i32) {
    %c0_i32 = arith.constant 0 : i32
    %c0_i32_0 = arith.constant 0 : i32
    return %arg0, %c0_i32 : i32, i32
  }
}

</mosaic_0001>

<bundles_post_ra>
// kernel: tpu_custom_call.1
= control target key start
LH: loop header
LB: loop body
LE: loop exit
PB: predicated region body
PF: predicated region fallthrough
CT: control target
= control target key end

     0   :  { %7 = vsyncpa [#allocation3], 0  ;;  %s351_s0 = inlined_call_operand.hbm [shape: bf16[16,128], index: 0, kind: input, shape index: {}]   ;;  %s352_s1 = inlined_call_operand.hbm [shape: bf16[128,128], index: 1, kind: input, shape index: {}]   ;;  %s353_s2 = inlined_call_operand.hbm [shape: bf16[16,128], index: 2, kind: output, shape index: {}]  }
   0x1   :  { %8 = vsyncpa [#allocation6], 0 }
   0x2   :  { %9 = vsyncpa [#allocation4], 0  ;;  %s311_s9 = smov [#allocation2]  }
   0x3   :  { %s15_s10 = sshll.u32 %s311_s9, 4  ;;  %s16_s10 = int_to_ptr.vmem [resolvable:$true] %s15_s10 }
   0x4   :  { %s253_s11 = scalar_lea.vmem %s16_s10, 128  ;;  %p258_p1 = scmp.lt.s32.totalorder %s16_s10, %s16_s10 }
   0x5   :  { %p254_p0 = scmp.ne.s32.totalorder %s16_s10, %s253_s11  ;;  %p259_p2 = scmp.lt.s32.totalorder %s253_s11, %s253_s11 }
   0x7   :  { %p260_p3 = por %p259_p2, %p258_p1 }
   0x9   :  { %p261_p4 = pnand %p260_p3, %p254_p0 }
   0xb   :  { %264 = shalt.err (!%p261_p4)
}
   0xc   :  { %s312_s12 = smov 64   ;;  %s313_s13 = smov 4  }
   0xd   :  { %21 = dma.hbm_to_vmem [thread:$0]  %s351_s0, 128, %s16_s10, [#allocation3], %s312_s12, %s312_s12, %s313_s13  }
   0xe   :  { %s314_s16 = smov [#allocation5]  }
   0xf   :  { %s27_s17 = sshll.u32 %s314_s16, 4  ;;  %s28_s17 = int_to_ptr.vmem [resolvable:$true] %s27_s17 }
  0x10   :  { %s273_s18 = scalar_lea.vmem %s28_s17, 1024  ;;  %p278_p6 = scmp.lt.s32.totalorder %s28_s17, %s28_s17 }
  0x11   :  { %p274_p5 = scmp.ne.s32.totalorder %s28_s17, %s273_s18  ;;  %p279_p7 = scmp.lt.s32.totalorder %s273_s18, %s273_s18 }
  0x13   :  { %p280_p8 = por %p279_p7, %p278_p6 }
  0x15   :  { %p281_p9 = pnand %p280_p8, %p274_p5 }
  0x17   :  { %284 = shalt.err (!%p281_p9)
}
  0x18   :  { %33 = dma.hbm_to_vmem [thread:$0]  %s352_s1, 1024, %s28_s17, [#allocation6], %s312_s12, %s312_s12, %s313_s13  }
  0x19   :  { %305 = dma.done.wait [#allocation3], 128  }
  0x1a   :  { %306 = vsyncadd [#allocation3], 4294967168 }
  0x1b   :  { %307 = dma.done.wait [#allocation6], 1024  }
  0x1c   :  { %308 = vsyncadd [#allocation6], 4294966272  ;;  %v315_v0 = vmov 0.0   ;;  %vm316_vm0 = vmmov 0   ;;  %v236_v1 = vld [vmem:[#allocation5 + $0x38] sm:$0xff]   ;;  %v237_v2 = vld [vmem:[#allocation5 + $0x30] sm:$0xff]  }
  0x1d   :  { %209 = vmatprep.subr.bf16.mxu0 %v315_v0  ;;  %225 = vmatprep.mubr.msk.bf16.mxu0 %vm316_vm0, %v315_v0  ;;  %v238_v3 = vld [vmem:[#allocation5 + $0x28] sm:$0xff]   ;;  %v239_v4 = vld [vmem:[#allocation5 + $0x20] sm:$0xff]   ;;  %v240_v5 = vld [vmem:[#allocation5 + $0x18] sm:$0xff]   ;;  %s317_s0 = smov [#allocation7]  }
  0x1e   :  { %210 = vmatpush3.bf16.msra.mxu0 %v236_v1  ;;  %v241_v6 = vld [vmem:[#allocation5 + $0x10] sm:$0xff]   ;;  %v242_v7 = vld [vmem:[#allocation5 + $0x8] sm:$0xff]   ;;  %v243_v8 = vld [vmem:[#allocation5] sm:$0xff]   ;;  %s169_s1 = sshll.u32 %s317_s0, 4  ;;  %s170_s1 = int_to_ptr.vmem [resolvable:$true] %s169_s1 }
  0x1f   :  { %211 = vmatprep.subr.bf16.mxu0 %v315_v0  ;;  %v244_v9 = vld [vmem:[#allocation2] sm:$0xff]   ;;  %s285_s21 = scalar_lea.vmem %s170_s1, 128  ;;  %p290_p11 = scmp.lt.s32.totalorder %s170_s1, %s170_s1 }
  0x20   :  { %p286_p10 = scmp.ne.s32.totalorder %s170_s1, %s285_s21  ;;  %p291_p12 = scmp.lt.s32.totalorder %s285_s21, %s285_s21 }
  0x22   :  { %212 = vmatpush3.bf16.msra.mxu0 %v237_v2  ;;  %p292_p13 = por %p291_p12, %p290_p11 }
  0x23   :  { %213 = vmatprep.subr.bf16.mxu0 %v315_v0 }
  0x24   :  { %p293_p0 = pnand %p292_p13, %p286_p10 }
  0x26   :  { %214 = vmatpush3.bf16.msra.mxu0 %v238_v3 }
  0x27   :  { %215 = vmatprep.subr.bf16.mxu0 %v315_v0 }
  0x2a   :  { %216 = vmatpush3.bf16.msra.mxu0 %v239_v4 }
  0x2b   :  { %217 = vmatprep.subr.bf16.mxu0 %v315_v0 }
  0x2e   :  { %218 = vmatpush3.bf16.msra.mxu0 %v240_v5 }
  0x2f   :  { %219 = vmatprep.subr.bf16.mxu0 %v315_v0 }
  0x32   :  { %220 = vmatpush3.bf16.msra.mxu0 %v241_v6 }
  0x33   :  { %221 = vmatprep.subr.bf16.mxu0 %v315_v0 }
  0x36   :  { %222 = vmatpush3.bf16.msra.mxu0 %v242_v7 }
  0x37   :  { %223 = vmatprep.subr.bf16.mxu0 %v315_v0 }
  0x3a   :  { %224 = vmatpush3.bf16.msra.mxu0 %v243_v8 }
  0x3d   :  { %226 = vmatmul.mubr.bf16.vlgmr.msra.gmra.mxu0 %v244_v9 }
  0xfd   :  { %v147_v10 = vpop.f32.mrf.mxu0 }
  0xff   :  { %v227_v11 = vpop.f32.mrf.mxu0 }
 0x101   :  { %v150_v12 = vpop.f32.mrf.mxu0 }
 0x102   :  { %v198_v13 = vpack.c.bf16 %v150_v12, %v147_v10 }
 0x103   :  { %v228_v14 = vpop.f32.mrf.mxu0 }
 0x104   :  { %199 = vst [vmem:[#allocation7] sm:$0xff] %v198_v13  }
 0x105   :  { %296 = shalt.err (!%p293_p0)
}
 0x106   :  { %175 = dma.vmem_to_hbm [thread:$0]  %s170_s1, 128, %s353_s2, [#allocation4], %s312_s12, %s312_s12, %s313_s13  }
 0x107   :  { %309 = dma.done.wait [#allocation4], 128  }
 0x108   :  { %310 = vsyncadd [#allocation4], 4294967168 }
 0x109   :  { %179 = vsyncpa [#allocation3], 1 }
 0x10a   :  { %180 = vsyncpa [#allocation6], 1 }
 0x10b   :  { %181 = vsyncpa [#allocation4], 1 }

</bundles_post_ra>
